<compile_context>
chip_gen: v7x
topology: tpu7x:2x2x1
jax: 0.10.0
libtpu: 0.0.40
codegen_flags: <defaults>
</compile_context>

<pallas_src>
import functools

import jax
import jax.numpy as jnp
from jax.experimental import pallas as pl
from jax.experimental.pallas import tpu as pltpu


def _leaky_relu_kernel(x_ref, o_ref, *, negative_slope: float):
    x = x_ref[...]
    zero = jnp.zeros((), dtype=x.dtype)
    slope = jnp.asarray(negative_slope, dtype=x.dtype)
    # Exactly mirrors torch: max(x, 0) + negative_slope * min(x, 0)
    o_ref[...] = jnp.maximum(x, zero) + slope * jnp.minimum(x, zero)


def _round_up(n: int, m: int) -> int:
    return -(-n // m) * m


def _tpu_params():
    """Returns (vmem_capacity_bytes, tensorcores_per_chip) with safe fallbacks."""
    vmem = 64 * 1024 * 1024
    try:
        vmem = int(pltpu.get_tpu_info().vmem_capacity_bytes)
    except Exception:
        pass
    # v7x: 2 TensorCores, 64 MiB VMEM per core.  v5e/v6e: 1 TC, 128 MiB.
    cores = 2 if vmem <= 64 * 1024 * 1024 else 1
    return vmem, cores


def _vmem_limit(block_bytes: int, vmem_cap: int) -> int:
    # Input + output, each double-buffered => ~4x block resident, plus headroom.
    return int(min(vmem_cap // 2, max(32 << 20, 4 * block_bytes + (16 << 20))))


def _choose_row_tile(rows: int, row_bytes: int, sub: int, cores: int) -> int:
    """Rows per block: sublane-aligned, byte-budgeted, >= 8 grid steps on 2-TC chips."""
    if rows <= sub:
        return rows  # single full block (block dim == array dim is always legal)
    # Per-block byte budget: ~4 MiB on 2-TC/64 MiB chips (v7x), ~8 MiB on
    # single-TC/128 MiB chips (v5e/v6e).
    budget = (4 << 20) if cores >= 2 else (8 << 20)
    tile = max(sub, (budget // row_bytes) // sub * sub)
    if cores >= 2:
        # Aim for >= 8 grid steps (>= 4 per TensorCore) so the "parallel" axis
        # shards across both cores with DMA/compute/writeback overlapped, but
        # never shrink blocks below ~2 MiB.
        min_tile = max(sub, ((2 << 20) // row_bytes) // sub * sub)
        by_steps = max(min_tile, _round_up(pl.cdiv(rows, 8), sub))
        tile = min(tile, by_steps)
    if tile >= rows:
        return rows
    if cores >= 2:
        # Prefer an even step count (core balance) when it keeps blocks >= 2 MiB.
        grid = pl.cdiv(rows, tile)
        if grid % 2 == 1:
            alt = _round_up(pl.cdiv(rows, grid + 1), sub)
            if sub <= alt < rows and alt * row_bytes >= (2 << 20) \
                    and pl.cdiv(rows, alt) % 2 == 0:
                tile = alt
    return tile


@functools.partial(jax.jit, static_argnames=("negative_slope",))
def leaky_relu(x: jax.Array, *, negative_slope: float = 0.01) -> jax.Array:
    """LeakyReLU over an arbitrary-shape (e.g. NCHW) tensor via a Pallas TPU kernel."""
    orig_shape = x.shape
    dtype = x.dtype
    n = x.size
    if n == 0:
        return x

    itemsize = jnp.dtype(dtype).itemsize
    sub = {4: 8, 2: 16, 1: 32}.get(itemsize, 8)  # sublane pack per dtype width
    vmem_cap, cores = _tpu_params()
    kernel = functools.partial(_leaky_relu_kernel, negative_slope=negative_slope)

    x_flat = x.reshape(-1)  # bitcast, no HBM copy

    # Pick a lane-dense width (multiple of 128) that divides n exactly.
    lane = next((l for l in (512, 256, 128) if n % l == 0), None)

    if lane is not None:
        # ---- hot path: lane-dense (rows, lane) slab, ragged row grid ----
        rows = n // lane
        row_bytes = lane * itemsize
        tile_r = _choose_row_tile(rows, row_bytes, sub, cores)
        grid = (pl.cdiv(rows, tile_r),)
        block_bytes = tile_r * row_bytes
        x2d = x_flat.reshape(rows, lane)

        out = pl.pallas_call(
            kernel,
            out_shape=jax.ShapeDtypeStruct((rows, lane), dtype),
            grid_spec=pltpu.PrefetchScalarGridSpec(
                num_scalar_prefetch=0,
                grid=grid,
                in_specs=[pl.BlockSpec((tile_r, lane), lambda i: (i, 0))],
                out_specs=pl.BlockSpec((tile_r, lane), lambda i: (i, 0)),
            ),
            compiler_params=pltpu.CompilerParams(
                dimension_semantics=("parallel",),
                vmem_limit_bytes=_vmem_limit(block_bytes, vmem_cap),
            ),
        )(x2d)
    else:
        # ---- awkward sizes (n % 128 != 0): copy-free (1, n) layout, tiled
        # along lanes; ragged last block is masked by Pallas (no pad/slice).
        max_chunk = 128 * 1024  # elements, multiple of 128
        chunk = n if n <= max_chunk else max_chunk
        grid = (pl.cdiv(n, chunk),)
        # (1, chunk) blocks may be sublane-padded in VMEM: ~32 bytes/element
        # worst case regardless of dtype width.
        block_bytes = chunk * 32
        x2d = x_flat.reshape(1, n)

        out = pl.pallas_call(
            kernel,
            out_shape=jax.ShapeDtypeStruct((1, n), dtype),
            grid_spec=pltpu.PrefetchScalarGridSpec(
                num_scalar_prefetch=0,
                grid=grid,
                in_specs=[pl.BlockSpec((1, chunk), lambda i: (0, i))],
                out_specs=pl.BlockSpec((1, chunk), lambda i: (0, i)),
            ),
            compiler_params=pltpu.CompilerParams(
                dimension_semantics=("parallel",),
                vmem_limit_bytes=_vmem_limit(block_bytes, vmem_cap),
            ),
        )(x2d)

    return out.reshape(orig_shape)


if __name__ == "__main__":
    key = jax.random.PRNGKey(0)
    # Small NCHW input consistent with a GAN conv activation.
    x = jax.random.normal(key, (2, 4, 16, 16), dtype=jnp.float32)

    out = leaky_relu(x, negative_slope=0.01)
    out = jax.block_until_ready(out)

    # Reference check in plain JAX (same formula as the torch module).
    ref = jnp.maximum(x, 0.0) + 0.01 * jnp.minimum(x, 0.0)
    assert out.shape == x.shape and out.dtype == x.dtype
    assert jnp.allclose(out, ref, atol=1e-6, rtol=1e-6)

    # Awkward shape (element count not a multiple of 128) exercises the
    # copy-free (1, n) lane-tiled path.
    x2 = jax.random.normal(jax.random.PRNGKey(1), (2, 3, 7, 7), dtype=jnp.float32)
    out2 = jax.block_until_ready(leaky_relu(x2, negative_slope=0.2))
    ref2 = jnp.maximum(x2, 0.0) + 0.2 * jnp.minimum(x2, 0.0)
    assert jnp.allclose(out2, ref2, atol=1e-6, rtol=1e-6)

    print("KERNEL_OK")
</pallas_src>

<mosaic_0001>
module attributes {stable_mosaic.version = 11 : i64} {
  func.func @_leaky_relu_kernel(%arg0: i32, %arg1: memref<4x512xf32, #tpu.memory_space<vmem>>, %arg2: memref<4x512xf32, #tpu.memory_space<vmem>>) attributes {dimension_semantics = [#tpu.dimension_semantics<parallel>], iteration_bounds = array<i64: 1>, scalar_prefetch = 0 : i64, scratch_operands = 0 : i64, tpu.core_type = #tpu.core_type<tc>, window_params = [{transform_indices = @transform_0, window_bounds = array<i64: 4, 512>}, {transform_indices = @transform_1, window_bounds = array<i64: 4, 512>}]} {
    %c0 = arith.constant 0 : index
    %c0_0 = arith.constant 0 : index
    %0 = vector.load %arg1[%c0, %c0_0] : memref<4x512xf32, #tpu.memory_space<vmem>>, vector<4x512xf32>
    %cst = arith.constant 0.000000e+00 : f32
    %1 = vector.broadcast %cst : f32 to vector<4x512xf32>
    %2 = arith.maximumf %0, %1 : vector<4x512xf32>
    %cst_1 = arith.constant 0.000000e+00 : f32
    %3 = vector.broadcast %cst_1 : f32 to vector<4x512xf32>
    %4 = arith.minimumf %0, %3 : vector<4x512xf32>
    %cst_2 = arith.constant 0.00999999977 : f32
    %5 = vector.broadcast %cst_2 : f32 to vector<4x512xf32>
    %6 = arith.mulf %5, %4 : vector<4x512xf32>
    %7 = arith.addf %2, %6 : vector<4x512xf32>
    %c0_3 = arith.constant 0 : index
    %c0_4 = arith.constant 0 : index
    %8 = vector.load %arg2[%c0_3, %c0_4] : memref<4x512xf32, #tpu.memory_space<vmem>>, vector<4x512xf32>
    tpu.vector_store %arg2[%c0_3, %c0_4], %7 {strides = array<i32>} : memref<4x512xf32, #tpu.memory_space<vmem>>, vector<4x512xf32>,
    return
  }
  func.func @transform_0(%arg0: i32) -> (i32, i32) {
    %c0_i32 = arith.constant 0 : i32
    %c0_i32_0 = arith.constant 0 : i32
    return %arg0, %c0_i32 : i32, i32
  }
  func.func @transform_1(%arg0: i32) -> (i32, i32) {
    %c0_i32 = arith.constant 0 : i32
    %c0_i32_0 = arith.constant 0 : i32
    return %arg0, %c0_i32 : i32, i32
  }
}

</mosaic_0001>

<bundles_post_ra>
// kernel: leaky_relu.1
= control target key start
LH: loop header
LB: loop body
LE: loop exit
PB: predicated region body
PF: predicated region fallthrough
CT: control target
= control target key end

     0   :  { %s46_s0 = inlined_call_operand.vmem [shape: f32[4,512], index: 0, kind: input, shape index: {}]   ;;  %s47_s1 = inlined_call_operand.vmem [shape: f32[4,512], index: 1, kind: output, shape index: {}]  }
   0x1   :  { %v8_v0 = vld [vmem:[%s46_s0] sm:$0xff]  ;;  %v9_v1 = vld [vmem:[%s46_s0 + $0x8] sm:$0xff] }
   0x2   :  { %v10_v2 = vmax.f32 %v8_v0, 0.0  ;;  %v12_v3 = vmin.f32 %v8_v0, 0.0  ;;  %v11_v4 = vmax.f32 %v9_v1, 0.0  ;;  %v13_v5 = vmin.f32 %v9_v1, 0.0 }
   0x4   :  { %v14_v6 = vmul.f32 0.01, %v12_v3  ;;  %v15_v7 = vmul.f32 0.01, %v13_v5 }
   0x6   :  { %v16_v8 = vadd.f32 %v14_v6, %v10_v2  ;;  %v17_v9 = vadd.f32 %v15_v7, %v11_v4 }
   0x8   :  { %18 = vst [vmem:[%s47_s1] sm:$0xff] %v16_v8  ;;  %19 = vst [vmem:[%s47_s1 + $0x8] sm:$0xff] %v17_v9 }

</bundles_post_ra>
